<compile_context>
chip_gen: v6e
topology: v6e:2x2x1
jax: 0.10.0
libtpu: 0.0.40
codegen_flags: <defaults>
</compile_context>

<pallas_src>
import functools

import jax
import jax.numpy as jnp
from jax import lax
from jax.experimental import pallas as pl
from jax.experimental.pallas import tpu as pltpu


def _round_up(x, m):
    return ((x + m - 1) // m) * m


_CHUNK = 1024                     # in-kernel compute chunk (lanes)
_MAX_TILE = 64 * 1024             # max pixel tile (lanes)
_VMEM_BUDGET = 20 * 1024 * 1024   # working-set budget for the tile heuristic
_SUBLANE = {1: 32, 2: 16, 4: 8}   # min sublane multiple per dtype itemsize


def _ce2d_kernel(logits_ref, target_ref, sum_out_ref, cnt_out_ref,
                 sum_acc, cnt_acc, *, ignore_label, hw, tile, chunk,
                 tiles_per_split):
    n = sum_acc.shape[0]
    c = logits_ref.shape[1]
    s = pl.program_id(0)
    j = pl.program_id(1)

    @pl.when(j == 0)
    def _():
        sum_acc[...] = jnp.zeros_like(sum_acc)
        cnt_acc[...] = jnp.zeros_like(cnt_acc)

    # Global pixel index of lane 0 of this tile. The ragged tail of the last
    # real tile and the overflow tile of split 1 (odd tile counts) are both
    # rejected via `pix < hw`.
    pix_base = (s * tiles_per_split + j) * tile

    # Loop-invariant iotas, hoisted out of the chunk loop.
    lane_iota = lax.broadcasted_iota(jnp.int32, (n, chunk), 1)
    cls_iota = lax.broadcasted_iota(jnp.int32, (n, c, chunk), 1)

    def process(off):
        x = logits_ref[:, :, pl.ds(off, chunk)]                    # (n, c, CH)
        tgt = target_ref[:, pl.ds(off, chunk)].astype(jnp.int32)   # (n, CH)

        pix = pix_base + off + lane_iota
        valid = jnp.logical_and(
            jnp.logical_and(tgt >= 0, tgt != ignore_label), pix < hw)

        # Class-axis max and one-hot gather in the input dtype (exact); only
        # (x - m), exp and log in f32.  loss = lse - x[tgt] = log(se) - d[tgt].
        m = jnp.max(x, axis=1)                                     # (n, CH)
        d = x.astype(jnp.float32) - m.astype(jnp.float32)[:, None, :]
        se = jnp.sum(jnp.exp(d), axis=1)                           # (n, CH) f32
        # NOTE: labels >= c (other than ignore_label) silently give d[tgt]=0
        # (loss = lse), unlike PyTorch which asserts on invalid labels.
        tgt_d = jnp.sum(jnp.where(cls_iota == tgt[:, None, :], d, 0.0), axis=1)
        per_pixel = jnp.log(se) - tgt_d                            # (n, CH)

        # Masking must stay a select (never a multiply): tail / overflow lanes
        # may hold garbage (possibly NaN/Inf) from edge-clipped DMAs.
        sum_acc[:, pl.ds(off, chunk)] += jnp.where(valid, per_pixel, 0.0)
        cnt_acc[:, pl.ds(off, chunk)] += valid.astype(jnp.float32)

    num_chunks = tile // chunk
    if num_chunks == 1:
        process(0)
    else:
        def body(ci, carry):
            process(pl.multiple_of(ci * chunk, chunk))
            return carry
        lax.fori_loop(0, num_chunks, body, 0)

    @pl.when(j == pl.num_programs(1) - 1)
    def _():
        # One lane reduce per split; tiny lane-dense (1, n, 128) writeback.
        sum_out_ref[...] = jnp.broadcast_to(
            jnp.sum(sum_acc[...], axis=-1, keepdims=True), (n, 128))[None]
        cnt_out_ref[...] = jnp.broadcast_to(
            jnp.sum(cnt_acc[...], axis=-1, keepdims=True), (n, 128))[None]


def cross_entropy_2d(predict, target, weight=None, *, size_average=True,
                     ignore_label=255, tile_pixels=None):
    """predict: (n, c, h, w) float; target: (n, h, w) int. Returns scalar loss."""
    # TODO(synk): `weight` (per-class rescaling) and `temperature` (which in
    # the reference oddly divides the integer labels) are not supported; the
    # defaults (weight=None, temperature=None) are reproduced exactly.
    assert weight is None
    n, c, h, w = predict.shape
    assert target.shape == (n, h, w)

    hw = h * w
    # Free reshapes only: no transpose, no padding, HBM dtypes preserved.
    logits = predict.reshape(n, c, hw)
    tgt = target.reshape(n, hw)
    if not (jnp.issubdtype(tgt.dtype, jnp.integer) and tgt.dtype.itemsize <= 4):
        tgt = tgt.astype(jnp.int32)

    dtype_bytes = jnp.dtype(logits.dtype).itemsize
    c_pad = _round_up(c, _SUBLANE.get(dtype_bytes, 8))
    n_pad = _round_up(n, 8)

    # Pixel tile: as large as fits the VMEM budget (double-buffered,
    # sublane-padded logits + targets, plus the two resident f32 accumulators),
    # capped at 64K lanes and rounded to a multiple of the compute chunk.
    if tile_pixels is None:
        tgt_bytes = jnp.dtype(tgt.dtype).itemsize
        tgt_pad = _round_up(n, _SUBLANE.get(tgt_bytes, 8))
        bytes_per_pixel = (2 * n * c_pad * dtype_bytes   # logits double buffer
                           + 2 * tgt_pad * tgt_bytes     # target double buffer
                           + 2 * n_pad * 4)              # resident accumulators
        t = _VMEM_BUDGET // max(1, bytes_per_pixel)
        t = min(t, _MAX_TILE)
    else:
        t = tile_pixels
    t = max(128, (t // 128) * 128)
    t = min(t, _round_up(hw, 128))
    if t > _CHUNK:
        t = (t // _CHUNK) * _CHUNK
    chunk = min(t, _CHUNK)

    num_tiles = -(-hw // t)
    # Unconditional 2-way split of the pixel range (sharded across both
    # TensorCores on v7x megacore; a 2-iteration outer loop on v5e/v6e).
    num_splits = 2 if num_tiles >= 2 else 1
    tiles_per_split = -(-num_tiles // num_splits)

    def pix_block(s, j):
        # Clamp the possibly-missing last tile of split 1 (odd tile counts)
        # onto a valid block; its pixels are fully masked inside the kernel.
        return jnp.minimum(s * tiles_per_split + j, num_tiles - 1)

    kernel = functools.partial(
        _ce2d_kernel, ignore_label=ignore_label, hw=hw, tile=t, chunk=chunk,
        tiles_per_split=tiles_per_split)

    sum_out, cnt_out = pl.pallas_call(
        kernel,
        out_shape=(jax.ShapeDtypeStruct((num_splits, n, 128), jnp.float32),
                   jax.ShapeDtypeStruct((num_splits, n, 128), jnp.float32)),
        grid_spec=pltpu.PrefetchScalarGridSpec(
            num_scalar_prefetch=0,
            grid=(num_splits, tiles_per_split),
            in_specs=[
                pl.BlockSpec((n, c, t), lambda s, j: (0, 0, pix_block(s, j))),
                pl.BlockSpec((n, t), lambda s, j: (0, pix_block(s, j))),
            ],
            out_specs=[
                pl.BlockSpec((1, n, 128), lambda s, j: (s, 0, 0)),
                pl.BlockSpec((1, n, 128), lambda s, j: (s, 0, 0)),
            ],
            scratch_shapes=[pltpu.VMEM((n, t), jnp.float32),
                            pltpu.VMEM((n, t), jnp.float32)],
        ),
        compiler_params=pltpu.CompilerParams(
            dimension_semantics=("parallel", "arbitrary"),
            vmem_limit_bytes=32 * 1024 * 1024),
    )(logits, tgt)

    loss_sum = jnp.sum(sum_out[:, :, 0])
    valid_cnt = jnp.sum(cnt_out[:, :, 0])

    if size_average:
        # Reference returns 0 when there are no valid pixels.
        return jnp.where(valid_cnt > 0, loss_sum / valid_cnt, 0.0)
    return loss_sum


def _reference_ce2d(predict, target, *, size_average=True, ignore_label=255):
    """Pure-JAX reference matching F.cross_entropy on masked pixels."""
    n, c, h, w = predict.shape
    logits = jnp.transpose(predict, (0, 2, 3, 1)).reshape(-1, c).astype(jnp.float32)
    tgt = target.reshape(-1).astype(jnp.int32)
    valid = jnp.logical_and(tgt >= 0, tgt != ignore_label)
    lse = jax.nn.logsumexp(logits, axis=-1)
    tl = jnp.take_along_axis(
        logits, jnp.clip(tgt, 0, c - 1)[:, None], axis=-1)[:, 0]
    per_pixel = lse - tl
    s = jnp.sum(jnp.where(valid, per_pixel, 0.0))
    cnt = jnp.sum(valid.astype(jnp.float32))
    if size_average:
        return jnp.where(cnt > 0, s / cnt, 0.0)
    return s


if __name__ == "__main__":
    key = jax.random.PRNGKey(0)

    def make_case(k, n, c, h, w, ignore_label):
        k1, k2, k3 = jax.random.split(k, 3)
        predict = jax.random.normal(k1, (n, c, h, w), dtype=jnp.float32)
        target = jax.random.randint(k2, (n, h, w), 0, c, dtype=jnp.int32)
        drop = jax.random.bernoulli(k3, 0.2, (n, h, w))
        target = jnp.where(drop, jnp.int32(ignore_label), target)
        return predict, target

    cases = [
        # (n, c, h, w, tile_pixels, size_average)
        (2, 4, 16, 16, None, True),   # single tile / split / chunk
        (2, 5, 32, 32, 256, True),    # 4 tiles -> even 2-way split
        (1, 3, 10, 10, None, False),  # ragged tail (hw=100), sum reduction
        (1, 4, 20, 19, 128, True),    # odd tile count -> clamped overflow tile
        (2, 4, 64, 40, None, True),   # big tile -> 2 in-kernel chunks + tail
    ]
    keys = jax.random.split(key, len(cases))
    for kk, (n, c, h, w, tp, avg) in zip(keys, cases):
        predict, target = make_case(kk, n, c, h, w, 255)
        loss = cross_entropy_2d(predict, target, size_average=avg,
                                ignore_label=255, tile_pixels=tp)
        loss = jax.block_until_ready(loss)
        ref = _reference_ce2d(predict, target, size_average=avg,
                              ignore_label=255)
        assert jnp.allclose(loss, ref, rtol=1e-5, atol=1e-5), (loss, ref)

    print("KERNEL_OK")
</pallas_src>

<mosaic_0001>
module attributes {stable_mosaic.version = 11 : i64} {
  func.func @_ce2d_kernel(%arg0: i32, %arg1: i32, %arg2: memref<2x4x256xf32, #tpu.memory_space<vmem>>, %arg3: memref<2x256xi32, #tpu.memory_space<vmem>>, %arg4: memref<1x2x128xf32, #tpu.memory_space<vmem>>, %arg5: memref<1x2x128xf32, #tpu.memory_space<vmem>>, %arg6: memref<2x256xf32, #tpu.memory_space<vmem>>, %arg7: memref<2x256xf32, #tpu.memory_space<vmem>>) attributes {dimension_semantics = [#tpu.dimension_semantics<parallel>, #tpu.dimension_semantics<arbitrary>], iteration_bounds = array<i64: 1, 1>, scalar_prefetch = 0 : i64, scratch_operands = 2 : i64, tpu.core_type = #tpu.core_type<tc>, window_params = [{transform_indices = @transform_0, window_bounds = array<i64: 2, 4, 256>}, {transform_indices = @transform_1, window_bounds = array<i64: 2, 256>}, {transform_indices = @transform_2, window_bounds = array<i64: 1, 2, 128>}, {transform_indices = @transform_3, window_bounds = array<i64: 1, 2, 128>}]} {
    %c0_i32 = arith.constant 0 : i32
    %0 = arith.cmpi eq, %arg1, %c0_i32 : i32
    %1 = arith.extui %0 : i1 to i32
    %c0_i32_0 = arith.constant 0 : i32
    %2 = arith.cmpi ne, %1, %c0_i32_0 : i32
    scf.if %2 {
      %cst_22 = arith.constant 0.000000e+00 : f32
      %48 = vector.broadcast %cst_22 : f32 to vector<2x256xf32>
      %c0_23 = arith.constant 0 : index
      %c0_24 = arith.constant 0 : index
      %49 = vector.load %arg6[%c0_23, %c0_24] : memref<2x256xf32, #tpu.memory_space<vmem>>, vector<2x256xf32>
      tpu.vector_store %arg6[%c0_23, %c0_24], %48 {strides = array<i32>} : memref<2x256xf32, #tpu.memory_space<vmem>>, vector<2x256xf32>,
      %cst_25 = arith.constant 0.000000e+00 : f32
      %50 = vector.broadcast %cst_25 : f32 to vector<2x256xf32>
      %c0_26 = arith.constant 0 : index
      %c0_27 = arith.constant 0 : index
      %51 = vector.load %arg7[%c0_26, %c0_27] : memref<2x256xf32, #tpu.memory_space<vmem>>, vector<2x256xf32>
      tpu.vector_store %arg7[%c0_26, %c0_27], %50 {strides = array<i32>} : memref<2x256xf32, #tpu.memory_space<vmem>>, vector<2x256xf32>,
    } else {
    }
    %c1_i32 = arith.constant 1 : i32
    %3 = arith.muli %arg0, %c1_i32 : i32
    %4 = arith.addi %3, %arg1 : i32
    %c256_i32 = arith.constant 256 : i32
    %5 = arith.muli %4, %c256_i32 : i32
    %6 = tpu.iota {dimensions = array<i32: 1>} : vector<2x256xi32>
    %7 = tpu.iota {dimensions = array<i32: 1>} : vector<2x4x256xi32>
    %c0 = arith.constant 0 : index
    %c0_1 = arith.constant 0 : index
    %c0_2 = arith.constant 0 : index
    %8 = vector.load %arg2[%c0, %c0_1, %c0_2] : memref<2x4x256xf32, #tpu.memory_space<vmem>>, vector<2x4x256xf32>
    %c0_3 = arith.constant 0 : index
    %c0_4 = arith.constant 0 : index
    %9 = vector.load %arg3[%c0_3, %c0_4] : memref<2x256xi32, #tpu.memory_space<vmem>>, vector<2x256xi32>
    %c0_i32_5 = arith.constant 0 : i32
    %10 = arith.addi %5, %c0_i32_5 : i32
    %11 = vector.broadcast %10 : i32 to vector<2x256xi32>
    %12 = arith.addi %11, %6 : vector<2x256xi32>
    %c0_i32_6 = arith.constant 0 : i32
    %13 = vector.broadcast %c0_i32_6 : i32 to vector<2x256xi32>
    %14 = arith.cmpi sge, %9, %13 : vector<2x256xi32>
    %c255_i32 = arith.constant 255 : i32
    %15 = vector.broadcast %c255_i32 : i32 to vector<2x256xi32>
    %16 = arith.cmpi ne, %9, %15 : vector<2x256xi32>
    %17 = arith.andi %14, %16 : vector<2x256xi1>
    %c256_i32_7 = arith.constant 256 : i32
    %18 = vector.broadcast %c256_i32_7 : i32 to vector<2x256xi32>
    %19 = arith.cmpi slt, %12, %18 : vector<2x256xi32>
    %20 = arith.andi %17, %19 : vector<2x256xi1>
    %cst = arith.constant dense<0xFF800000> : vector<2x256xf32>
    %21 = vector.multi_reduction <maximumf>, %8, %cst [1] : vector<2x4x256xf32> to vector<2x256xf32>
    %22 = vector.shape_cast %21 : vector<2x256xf32> to vector<2x1x256xf32>
    %23 = vector.broadcast %22 : vector<2x1x256xf32> to vector<2x4x256xf32>
    %24 = arith.subf %8, %23 : vector<2x4x256xf32>
    %25 = math.exp %24 : vector<2x4x256xf32>
    %cst_8 = arith.constant dense<0.000000e+00> : vector<2x256xf32>
    %26 = vector.multi_reduction <add>, %25, %cst_8 [1] : vector<2x4x256xf32> to vector<2x256xf32>
    %27 = vector.shape_cast %9 : vector<2x256xi32> to vector<2x1x256xi32>
    %28 = vector.broadcast %27 : vector<2x1x256xi32> to vector<2x4x256xi32>
    %29 = arith.cmpi eq, %7, %28 : vector<2x4x256xi32>
    %cst_9 = arith.constant 0.000000e+00 : f32
    %30 = vector.broadcast %cst_9 : f32 to vector<2x4x256xf32>
    %31 = arith.select %29, %24, %30 : vector<2x4x256xi1>, vector<2x4x256xf32>
    %cst_10 = arith.constant dense<0.000000e+00> : vector<2x256xf32>
    %32 = vector.multi_reduction <add>, %31, %cst_10 [1] : vector<2x4x256xf32> to vector<2x256xf32>
    %33 = math.log %26 : vector<2x256xf32>
    %34 = arith.subf %33, %32 : vector<2x256xf32>
    %c0_11 = arith.constant 0 : index
    %c0_12 = arith.constant 0 : index
    %35 = vector.load %arg6[%c0_11, %c0_12] : memref<2x256xf32, #tpu.memory_space<vmem>>, vector<2x256xf32>
    %cst_13 = arith.constant 0.000000e+00 : f32
    %36 = vector.broadcast %cst_13 : f32 to vector<2x256xf32>
    %37 = arith.select %20, %34, %36 : vector<2x256xi1>, vector<2x256xf32>
    %38 = arith.addf %35, %37 : vector<2x256xf32>
    %c0_14 = arith.constant 0 : index
    %c0_15 = arith.constant 0 : index
    %39 = vector.load %arg6[%c0_14, %c0_15] : memref<2x256xf32, #tpu.memory_space<vmem>>, vector<2x256xf32>
    tpu.vector_store %arg6[%c0_14, %c0_15], %38 {strides = array<i32>} : memref<2x256xf32, #tpu.memory_space<vmem>>, vector<2x256xf32>,
    %c0_16 = arith.constant 0 : index
    %c0_17 = arith.constant 0 : index
    %40 = vector.load %arg7[%c0_16, %c0_17] : memref<2x256xf32, #tpu.memory_space<vmem>>, vector<2x256xf32>
    %41 = arith.extui %20 : vector<2x256xi1> to vector<2x256xi32>
    %42 = arith.sitofp %41 : vector<2x256xi32> to vector<2x256xf32>
    %43 = arith.addf %40, %42 : vector<2x256xf32>
    %c0_18 = arith.constant 0 : index
    %c0_19 = arith.constant 0 : index
    %44 = vector.load %arg7[%c0_18, %c0_19] : memref<2x256xf32, #tpu.memory_space<vmem>>, vector<2x256xf32>
    tpu.vector_store %arg7[%c0_18, %c0_19], %43 {strides = array<i32>} : memref<2x256xf32, #tpu.memory_space<vmem>>, vector<2x256xf32>,
    %c0_i32_20 = arith.constant 0 : i32
    %45 = arith.cmpi eq, %arg1, %c0_i32_20 : i32
    %46 = arith.extui %45 : i1 to i32
    %c0_i32_21 = arith.constant 0 : i32
    %47 = arith.cmpi ne, %46, %c0_i32_21 : i32
    scf.if %47 {
      %c0_22 = arith.constant 0 : index
      %c0_23 = arith.constant 0 : index
      %48 = vector.load %arg6[%c0_22, %c0_23] : memref<2x256xf32, #tpu.memory_space<vmem>>, vector<2x256xf32>
      %cst_24 = arith.constant dense<0.000000e+00> : vector<2xf32>
      %49 = vector.multi_reduction <add>, %48, %cst_24 [1] : vector<2x256xf32> to vector<2xf32>
      %50 = vector.shape_cast %49 : vector<2xf32> to vector<2x1xf32>
      %51 = vector.shape_cast %50 : vector<2x1xf32> to vector<2x1xf32>
      %52 = vector.broadcast %51 : vector<2x1xf32> to vector<2x128xf32>
      %53 = vector.shape_cast %52 : vector<2x128xf32> to vector<1x2x128xf32>
      %c0_25 = arith.constant 0 : index
      %c0_26 = arith.constant 0 : index
      %c0_27 = arith.constant 0 : index
      %54 = vector.load %arg4[%c0_25, %c0_26, %c0_27] : memref<1x2x128xf32, #tpu.memory_space<vmem>>, vector<1x2x128xf32>
      tpu.vector_store %arg4[%c0_25, %c0_26, %c0_27], %53 {strides = array<i32>} : memref<1x2x128xf32, #tpu.memory_space<vmem>>, vector<1x2x128xf32>,
      %c0_28 = arith.constant 0 : index
      %c0_29 = arith.constant 0 : index
      %55 = vector.load %arg7[%c0_28, %c0_29] : memref<2x256xf32, #tpu.memory_space<vmem>>, vector<2x256xf32>
      %cst_30 = arith.constant dense<0.000000e+00> : vector<2xf32>
      %56 = vector.multi_reduction <add>, %55, %cst_30 [1] : vector<2x256xf32> to vector<2xf32>
      %57 = vector.shape_cast %56 : vector<2xf32> to vector<2x1xf32>
      %58 = vector.shape_cast %57 : vector<2x1xf32> to vector<2x1xf32>
      %59 = vector.broadcast %58 : vector<2x1xf32> to vector<2x128xf32>
      %60 = vector.shape_cast %59 : vector<2x128xf32> to vector<1x2x128xf32>
      %c0_31 = arith.constant 0 : index
      %c0_32 = arith.constant 0 : index
      %c0_33 = arith.constant 0 : index
      %61 = vector.load %arg5[%c0_31, %c0_32, %c0_33] : memref<1x2x128xf32, #tpu.memory_space<vmem>>, vector<1x2x128xf32>
      tpu.vector_store %arg5[%c0_31, %c0_32, %c0_33], %60 {strides = array<i32>} : memref<1x2x128xf32, #tpu.memory_space<vmem>>, vector<1x2x128xf32>,
    } else {
    }
    return
  }
  func.func @transform_0(%arg0: i32, %arg1: i32) -> (i32, i32, i32) {
    %c1_i32 = arith.constant 1 : i32
    %0 = arith.muli %arg0, %c1_i32 : i32
    %1 = arith.addi %0, %arg1 : i32
    %c0_i32 = arith.constant 0 : i32
    %2 = arith.minsi %1, %c0_i32 : i32
    %c0_i32_0 = arith.constant 0 : i32
    %c0_i32_1 = arith.constant 0 : i32
    %c0_i32_2 = arith.constant 0 : i32
    return %c0_i32_0, %c0_i32_1, %2 : i32, i32, i32
  }
  func.func @transform_1(%arg0: i32, %arg1: i32) -> (i32, i32) {
    %c1_i32 = arith.constant 1 : i32
    %0 = arith.muli %arg0, %c1_i32 : i32
    %1 = arith.addi %0, %arg1 : i32
    %c0_i32 = arith.constant 0 : i32
    %2 = arith.minsi %1, %c0_i32 : i32
    %c0_i32_0 = arith.constant 0 : i32
    %c0_i32_1 = arith.constant 0 : i32
    return %c0_i32_0, %2 : i32, i32
  }
  func.func @transform_2(%arg0: i32, %arg1: i32) -> (i32, i32, i32) {
    %c0_i32 = arith.constant 0 : i32
    %c0_i32_0 = arith.constant 0 : i32
    %c0_i32_1 = arith.constant 0 : i32
    return %arg0, %c0_i32, %c0_i32_0 : i32, i32, i32
  }
  func.func @transform_3(%arg0: i32, %arg1: i32) -> (i32, i32, i32) {
    %c0_i32 = arith.constant 0 : i32
    %c0_i32_0 = arith.constant 0 : i32
    %c0_i32_1 = arith.constant 0 : i32
    return %arg0, %c0_i32, %c0_i32_0 : i32, i32, i32
  }
}

</mosaic_0001>

<bundles_post_ra>
// kernel: tpu_custom_call.1
= control target key start
LH: loop header
LB: loop body
LE: loop exit
PB: predicated region body
PF: predicated region fallthrough
CT: control target
= control target key end

     0   :  { %9 = vsyncpa [#allocation5], 0  ;;  %s581_s0 = inlined_call_operand.hbm [shape: f32[2,4,256], index: 0, kind: input, shape index: {}]   ;;  %s582_s1 = inlined_call_operand.hbm [shape: s32[2,256], index: 1, kind: input, shape index: {}]   ;;  %s583_s2 = inlined_call_operand.hbm [shape: f32[1,2,128], index: 2, kind: output, shape index: {0}]   ;;  %s584_s3 = inlined_call_operand.hbm [shape: f32[1,2,128], index: 3, kind: output, shape index: {1}]  }
   0x1   :  { %10 = vsyncpa [#allocation8], 0 }
   0x2   :  { %11 = vsyncpa [#allocation6], 0 }
   0x3   :  { %12 = vsyncpa [#allocation11], 0  ;;  %s490_s12 = smov [#allocation4]  }
   0x4   :  { %s24_s13 = sshll.u32 %s490_s12, 4  ;;  %s25_s13 = int_to_ptr.vmem [resolvable:$true] %s24_s13 }
   0x5   :  { %s410_s14 = scalar_lea.vmem %s25_s13, 256  ;;  %p415_p1 = scmp.lt.s32.totalorder %s25_s13, %s25_s13 }
   0x6   :  { %p411_p0 = scmp.ne.s32.totalorder %s25_s13, %s410_s14  ;;  %p416_p2 = scmp.lt.s32.totalorder %s410_s14, %s410_s14 }
   0x8   :  { %p417_p3 = por %p416_p2, %p415_p1 }
   0xa   :  { %p418_p4 = pnand %p417_p3, %p411_p0 }
   0xc   :  { %421 = shalt.err (!%p418_p4)
}
   0xd   :  { %s491_s15 = smov 128   ;;  %s492_s16 = smov 8  }
   0xe   :  { %30 = dma.hbm_to_vmem [thread:$0]  %s581_s0, 256, %s25_s13, [#allocation5], %s491_s15, %s491_s15, %s492_s16  }
   0xf   :  { %s493_s19 = smov [#allocation7]  }
  0x10   :  { %s43_s20 = sshll.u32 %s493_s19, 4  ;;  %s44_s20 = int_to_ptr.vmem [resolvable:$true] %s43_s20 }
  0x11   :  { %s430_s21 = scalar_lea.vmem %s44_s20, 64  ;;  %p435_p6 = scmp.lt.s32.totalorder %s44_s20, %s44_s20 }
  0x12   :  { %p431_p5 = scmp.ne.s32.totalorder %s44_s20, %s430_s21  ;;  %p436_p7 = scmp.lt.s32.totalorder %s430_s21, %s430_s21 }
  0x14   :  { %p437_p8 = por %p436_p7, %p435_p6 }
  0x16   :  { %p438_p9 = pnand %p437_p8, %p431_p5 }
  0x18   :  { %441 = shalt.err (!%p438_p9)
}
  0x19   :  { %46 = dma.hbm_to_vmem [thread:$0]  %s582_s1, 64, %s44_s20, [#allocation8]  }
  0x1a   :  { %482 = dma.done.wait [#allocation5], 256  }
  0x1b   :  { %483 = vsyncadd [#allocation5], 4294967040 }
  0x1c   :  { %484 = dma.done.wait [#allocation8], 64  }
  0x1d   :  { %485 = vsyncadd [#allocation8], 4294967232  ;;  %v72_v0 = vlaneseq  ;;  %v494_v1 = vmov 0.0   ;;  %v495_v2 = vmov 1983009808   ;;  %v496_v5 = vmov 1  }
  0x1e   :  { %65 = vst [vmem:[#allocation2] sm:$0xf] %v494_v1  ;;  %v89_v3 = vunpack.c.l.s4 %v495_v2  ;;  %66 = vst [vmem:[#allocation3] sm:$0xf] %v494_v1  ;;  %v87_v6 = vcombine.low %v496_v5, %v496_v5  ;;  %vm103_vm0 = vcmask 1043456   ;;  %v74_v9 = vld [vmem:[#allocation4] sm:$0xff] }
  0x1f   :  { %v526_v4 = vshrl.u32 %v72_v0, 7  ;;  %v75_v10 = vld [vmem:[#allocation4 + $0x8] sm:$0xff]  ;;  %v76_v11 = vld [vmem:[#allocation7] sm:$0xf]  ;;  %v99_v13 = vcombine.high %v74_v9, %v74_v9  ;;  %v104_v17 = vsel %vm103_vm0, %v74_v9, -inf  ;;  %vm284_vm10 = vcmask 1041409  }
  0x20   :  { %v90_v7 = vunpack.c.0.s8 %v89_v3  ;;  %vm80_vm1 = vcmp.ge.s32.totalorder %v76_v11, 0  ;;  %vm81_vm2 = vcmp.ne.s32.totalorder %v76_v11, 255  ;;  %v100_v14 = vcombine.high %v75_v10, %v75_v10  ;;  %s498_s0 = smov [#allocation9]   ;;  %s499_s24 = smov [#allocation10]  }
  0x21   :  { %vm532_vm3 = vmand %vm80_vm1, %vm81_vm2  ;;  %v118_v18 = vsel %vm103_vm0, %v75_v10, -inf  ;;  %v105_v19 = vrot.slane %v104_v17, 4  ;;  %v111_v20 = vsel %vm103_vm0, %v99_v13, -inf  ;;  %v497_v37 = vmov 1966171168   ;;  %s347_s1 = sshll.u32 %s498_s0, 4  ;;  %s348_s1 = int_to_ptr.vmem [resolvable:$true] %s347_s1 }
  0x22   :  { %v529_v8 = vsub.s32 %v90_v7, %v526_v4  ;;  %v119_v21 = vrot.slane %v118_v18, 4  ;;  %v125_v22 = vsel %vm103_vm0, %v100_v14, -inf  ;;  %v112_v23 = vrot.slane %v111_v20, 4  ;;  %s357_s25 = sshll.u32 %s499_s24, 4  ;;  %s442_s26 = scalar_lea.vmem %s348_s1, 32  ;;  %s358_s25 = int_to_ptr.vmem [resolvable:$true] %s357_s25 }
  0x23   :  { %v126_v24 = vrot.slane %v125_v22, 4  ;;  %v106_v25 = vmax.f32 %v104_v17, %v105_v19  ;;  %v181_v38 = vunpack.c.l.s4 %v497_v37  ;;  %v190_v60 = vsub.s32 0, %v526_v4  ;;  %p443_p10 = scmp.ne.s32.totalorder %s348_s1, %s442_s26  ;;  %p447_p11 = scmp.lt.s32.totalorder %s348_s1, %s348_s1 }
  0x24   :  { %v94_v12 = vrot.slane %v87_v6, %v529_v8  ;;  %v120_v26 = vmax.f32 %v118_v18, %v119_v21  ;;  %v113_v27 = vmax.f32 %v111_v20, %v112_v23  ;;  %v194_v61 = vsub.s32 1, %v526_v4  ;;  %p448_p12 = scmp.lt.s32.totalorder %s442_s26, %s442_s26 }
  0x25   :  { %v127_v28 = vmax.f32 %v125_v22, %v126_v24  ;;  %v296_v29 = vld [vmem:[#allocation3] sm:$0xf]  ;;  %v107_v31 = vrot.slane %v106_v25, 2  ;;  %v182_v48 = vunpack.c.0.s8 %v181_v38  ;;  %vm286_vm11 = vcmask 1043459  }
  0x26   :  { %vm536_vm4 = vcmp.ne.s32.totalorder %v94_v12, 0  ;;  %v121_v32 = vrot.slane %v120_v26, 2  ;;  %v114_v33 = vrot.slane %v113_v27, 2  ;;  %vm288_vm12 = vcmask 1045509   ;;  %p449_p13 = por %p448_p12, %p447_p11 }
  0x27   :  { %vm96_vm5 = vmand %vm532_vm3, %vm536_vm4  ;;  %v128_v34 = vrot.slane %v127_v28, 2  ;;  %v108_v35 = vmax.f32 %v106_v25, %v107_v31  ;;  %v185_v53 = vsub.s32 %v182_v48, %v526_v4  ;;  %vm290_vm13 = vcmask 1047559  }
  0x28   :  { %v375_v30 = vsel %vm96_vm5, 1.0, %v494_v1  ;;  %v122_v36 = vmax.f32 %v120_v26, %v121_v32  ;;  %v115_v40 = vmax.f32 %v113_v27, %v114_v33  ;;  %vm316_vm14 = vcmask 1041408   ;;  %p450_p0 = pnand %p449_p13, %p443_p10 }
  0x29   :  { %v299_v39 = vadd.f32 %v375_v30, %v296_v29  ;;  %v129_v41 = vmax.f32 %v127_v28, %v128_v34  ;;  %v109_v42 = vrot.slane %v108_v35, 1  ;;  %v186_v58 = vrot.slane %v76_v11, %v185_v53 }
  0x2a   :  { %v123_v43 = vrot.slane %v122_v36, 1  ;;  %v116_v44 = vrot.slane %v115_v40, 1 }
  0x2b   :  { %300 = vst [vmem:[#allocation3] sm:$0xf] %v299_v39  ;;  %v130_v45 = vrot.slane %v129_v41, 1  ;;  %v110_v46 = vmax.f32 %v108_v35, %v109_v42  ;;  %v187_v59 = vcombine.high %v186_v58, %v186_v58  ;;  %v191_v62 = vrot.slane %v186_v58, %v190_v60 }
  0x2c   :  { %v124_v47 = vmax.f32 %v122_v36, %v123_v43  ;;  %v117_v49 = vmax.f32 %v115_v40, %v116_v44  ;;  %v195_v0 = vrot.slane %v186_v58, %v194_v61 }
  0x2d   :  { %v131_v50 = vmax.f32 %v129_v41, %v130_v45  ;;  %v199_v63 = vrot.slane %v187_v59, %v190_v60  ;;  %v203_v1 = vrot.slane %v187_v59, %v194_v61  ;;  %vm204_vm6 = vcmp.eq.s32.totalorder %v526_v4, %v191_v62 }
  0x2e   :  { %v136_v51 = vcombine.low %v110_v46, %v117_v49  ;;  %vm205_vm8 = vcmp.eq.s32.totalorder %v526_v4, %v195_v0 }
  0x2f   :  { %v137_v52 = vcombine.low %v124_v47, %v131_v50  ;;  %vm206_vm7 = vcmp.eq.s32.totalorder %v526_v4, %v199_v63  ;;  %vm207_vm9 = vcmp.eq.s32.totalorder %v526_v4, %v203_v1 }
  0x30   :  { %v140_v54 = vsub.f32 %v74_v9, %v136_v51 }
  0x31   :  { %v141_v55 = vsub.f32 %v75_v10, %v137_v52 }
  0x32   :  { %v142_v56 = vmul.f32 1.442695, %v140_v54  ;;  %v210_v2 = vcombine.high %v140_v54, %v140_v54  ;;  %v214_v6 = vsel %vm204_vm6, %v140_v54, 0.0 }
  0x33   :  { %v144_v57 = vmul.f32 1.442695, %v141_v55  ;;  %v211_v3 = vcombine.high %v141_v55, %v141_v55  ;;  %v216_v11 = vsel %vm206_vm7, %v141_v55, 0.0  ;;  %v218_v21 = vsel %vm103_vm0, %v214_v6, 0.0 }
  0x34   :  { %390 = vpow2.f32 %v142_v56  ;;  %v215_v17 = vsel %vm205_vm8, %v210_v2, 0.0  ;;  %v232_v24 = vsel %vm103_vm0, %v216_v11, 0.0  ;;  %v219_v30 = vrot.slane %v218_v21, 4 }
  0x35   :  { %392 = vpow2.f32 %v144_v57  ;;  %v217_v20 = vsel %vm207_vm9, %v211_v3, 0.0  ;;  %v225_v27 = vsel %vm103_vm0, %v215_v17, 0.0  ;;  %v233_v34 = vrot.slane %v232_v24, 4 }
  0x36   :  { %v239_v31 = vsel %vm103_vm0, %v217_v20, 0.0  ;;  %v226_v37 = vrot.slane %v225_v27, 4  ;;  %v220_v43 = vadd.f32 %v219_v30, %v218_v21 }
  0x37   :  { %v240_v40 = vrot.slane %v239_v31, 4  ;;  %v234_v46 = vadd.f32 %v233_v34, %v232_v24  ;;  %v377_v34 = vld.sshfl [vmem:[#allocation3] sm:$0x33 pattern:$0x76325410] }
  0x38   :  { %v227_v49 = vadd.f32 %v226_v37, %v225_v27  ;;  %v221_v54 = vrot.slane %v220_v43, 2 }
  0x39   :  { %v241_v52 = vadd.f32 %v240_v40, %v239_v31  ;;  %v235_v56 = vrot.slane %v234_v46, 2 }
  0x3a   :  { %v228_v57 = vrot.slane %v227_v49, 2  ;;  %v222_v59 = vadd.f32 %v221_v54, %v220_v43 }
  0x3b   :  { %v242_v58 = vrot.slane %v241_v52, 2  ;;  %v236_v60 = vadd.f32 %v235_v56, %v234_v46 }
  0x3c   :  { %v229_v61 = vadd.f32 %v228_v57, %v227_v49  ;;  %v223_v63 = vrot.slane %v222_v59, 1 }
  0x3d   :  { %v243_v62 = vadd.f32 %v242_v58, %v241_v52  ;;  %v237_v0 = vrot.slane %v236_v60, 1 }
  0x3e   :  { %v230_v1 = vrot.slane %v229_v61, 1  ;;  %v224_v3 = vadd.f32 %v223_v63, %v222_v59 }
  0x3f   :  { %v244_v2 = vrot.slane %v243_v62, 1  ;;  %v238_v6 = vadd.f32 %v237_v0, %v236_v60 }
  0x41   :  { %v391_v5 = vpop.eup %390 }
  0x42   :  { %v393_v7 = vpop.eup %392  ;;  %v148_v9 = vcombine.high %v391_v5, %v391_v5  ;;  %v152_v10 = vsel %vm103_vm0, %v391_v5, 0.0 }
  0x43   :  { %v149_v12 = vcombine.high %v393_v7, %v393_v7  ;;  %v153_v13 = vrot.slane %v152_v10, 4  ;;  %v166_v14 = vsel %vm103_vm0, %v393_v7, 0.0 }
  0x44   :  { %v159_v18 = vsel %vm103_vm0, %v148_v9, 0.0  ;;  %v167_v19 = vrot.slane %v166_v14, 4  ;;  %v231_v9 = vadd.f32 %v230_v1, %v229_v61 }
  0x45   :  { %v154_v22 = vadd.f32 %v153_v13, %v152_v10  ;;  %v160_v23 = vrot.slane %v159_v18, 4  ;;  %v173_v4 = vsel %vm103_vm0, %v149_v12, 0.0  ;;  %v245_v12 = vadd.f32 %v244_v2, %v243_v62 }
  0x46   :  { %v168_v25 = vadd.f32 %v167_v19, %v166_v14  ;;  %v174_v26 = vrot.slane %v173_v4, 4 }
  0x47   :  { %v155_v28 = vrot.slane %v154_v22, 2  ;;  %v161_v29 = vadd.f32 %v160_v23, %v159_v18 }
  0x48   :  { %v169_v32 = vrot.slane %v168_v25, 2  ;;  %v175_v33 = vadd.f32 %v174_v26, %v173_v4 }
  0x49   :  { %v156_v35 = vadd.f32 %v155_v28, %v154_v22  ;;  %v162_v36 = vrot.slane %v161_v29, 2 }
  0x4a   :  { %v170_v38 = vadd.f32 %v169_v32, %v168_v25  ;;  %v176_v39 = vrot.slane %v175_v33, 2 }
  0x4b   :  { %v157_v41 = vrot.slane %v156_v35, 1  ;;  %v163_v42 = vadd.f32 %v162_v36, %v161_v29  ;;  %v258_v29 = vld [vmem:[#allocation2] sm:$0xf] }
  0x4c   :  { %v171_v44 = vrot.slane %v170_v38, 1  ;;  %v177_v45 = vadd.f32 %v176_v39, %v175_v33  ;;  %v335_v39 = vsel %vm316_vm14, %v377_v34, 0.0 }
  0x4d   :  { %v158_v47 = vadd.f32 %v157_v41, %v156_v35  ;;  %v164_v48 = vrot.slane %v163_v42, 1 }
  0x4e   :  { %v172_v50 = vadd.f32 %v171_v44, %v170_v38  ;;  %v178_v51 = vrot.slane %v177_v45, 1 }
  0x4f   :  { %v165_v53 = vadd.f32 %v164_v48, %v163_v42  ;;  %394 = vlog2.f32 %v158_v47 }
  0x50   :  { %v179_v55 = vadd.f32 %v178_v51, %v177_v45  ;;  %396 = vlog2.f32 %v172_v50 }
  0x51   :  { %398 = vlog2.f32 %v165_v53 }
  0x52   :  { %400 = vlog2.f32 %v179_v55 }
  0x5c   :  { %v395_v5 = vpop.eup %394 }
  0x5d   :  { %v397_v7 = vpop.eup %396  ;;  %v247_v10 = vmul.f32 0.6931472, %v395_v5 }
  0x5e   :  { %v399_v11 = vpop.eup %398  ;;  %v251_v13 = vmul.f32 0.6931472, %v397_v7 }
  0x5f   :  { %v401_v14 = vpop.eup %400  ;;  %v249_v17 = vmul.f32 0.6931472, %v399_v11  ;;  %v254_v18 = vsub.f32 %v247_v10, %v224_v3 }
  0x60   :  { %v253_v19 = vmul.f32 0.6931472, %v401_v14  ;;  %v256_v20 = vsub.f32 %v251_v13, %v238_v6 }
  0x61   :  { %v255_v21 = vsub.f32 %v249_v17, %v231_v9 }
  0x62   :  { %v257_v22 = vsub.f32 %v253_v19, %v245_v12 }
  0x63   :  { %v263_v23 = vcombine.low %v254_v18, %v255_v21 }
  0x64   :  { %v271_v4 = vcombine.low %v256_v20, %v257_v22 }
  0x65   :  { %v270_v24 = vrot.slane %v263_v23, %v529_v8 }
  0x66   :  { %v278_v25 = vrot.slane %v271_v4, %v529_v8  ;;  %v332_v8 = vcombine.high %v377_v34, %v377_v34 }
  0x68   :  { %v283_v26 = vrot.slane %v278_v25, 7  ;;  %v336_v40 = vsel %vm316_vm14, %v332_v8, 0.0 }
  0x69   :  { %v337_v42 = vadd.f32 %v336_v40, %v335_v39 }
  0x6a   :  { %v285_v27 = vsel %vm284_vm10, %v283_v26, %v270_v24 }
  0x6b   :  { %v287_v28 = vsel %vm286_vm11, %v283_v26, %v285_v27 }
  0x6c   :  { %v289_v30 = vsel %vm288_vm12, %v283_v26, %v287_v28 }
  0x6d   :  { %v291_v31 = vsel %vm290_vm13, %v283_v26, %v289_v30 }
  0x6e   :  { %v293_v32 = vsel %vm96_vm5, %v291_v31, 0.0 }
  0x6f   :  { %v294_v33 = vadd.f32 %v293_v32, %v258_v29 }
  0x71   :  { %295 = vst [vmem:[#allocation2] sm:$0xf] %v294_v33 }
  0x78   :  { %v376_v35 = vld.sshfl [vmem:[#allocation2] sm:$0x33 pattern:$0x76325410] }
  0x79   :  { %v313_v36 = vcombine.high %v376_v35, %v376_v35  ;;  %v317_v37 = vsel %vm316_vm14, %v376_v35, 0.0 }
  0x7b   :  { %v318_v38 = vsel %vm316_vm14, %v313_v36, 0.0 }
  0x7c   :  { %v319_v41 = vadd.f32 %v318_v38, %v317_v37 }
  0x7e   :  { %320 = vadd.xlane.f32.xlu0 %v319_v41 }
  0x82   :  { %338 = vadd.xlane.f32.xlu0 %v337_v42 }
 0x107   :  { %v321_v15 = vpop.xlane.xlu0 %320 }
 0x108   :  { %322 = vst [vmem:[#allocation9] sm:$0x3] %v321_v15 }
 0x109   :  { %453 = shalt.err (!%p450_p0)
}
 0x10a   :  { %350 = dma.vmem_to_hbm [thread:$0]  %s348_s1, 32, %s583_s2, [#allocation6]  }
 0x10b   :  { %v339_v16 = vpop.xlane.xlu0 %338  ;;  %s462_s29 = scalar_lea.vmem %s358_s25, 32  ;;  %p467_p2 = scmp.lt.s32.totalorder %s358_s25, %s358_s25 }
 0x10c   :  { %340 = vst [vmem:[#allocation10] sm:$0x3] %v339_v16  ;;  %p463_p1 = scmp.ne.s32.totalorder %s358_s25, %s462_s29  ;;  %p468_p3 = scmp.lt.s32.totalorder %s462_s29, %s462_s29 }
 0x10e   :  { %p469_p4 = por %p468_p3, %p467_p2 }
 0x110   :  { %p470_p5 = pnand %p469_p4, %p463_p1 }
 0x112   :  { %473 = shalt.err (!%p470_p5)
}
 0x113   :  { %360 = dma.vmem_to_hbm [thread:$0]  %s358_s25, 32, %s584_s3, [#allocation11]  }
 0x114   :  { %486 = dma.done.wait [#allocation6], 32  }
 0x115   :  { %487 = vsyncadd [#allocation6], 4294967264 }
 0x116   :  { %488 = dma.done.wait [#allocation11], 32  }
 0x117   :  { %489 = vsyncadd [#allocation11], 4294967264 }
 0x118   :  { %367 = vsyncpa [#allocation5], 1 }
 0x119   :  { %368 = vsyncpa [#allocation8], 1 }
 0x11a   :  { %369 = vsyncpa [#allocation6], 1 }
 0x11b   :  { %370 = vsyncpa [#allocation11], 1 }

</bundles_post_ra>
